<compile_context>
chip_gen: v7x
topology: tpu7x:2x2x1
jax: 0.10.0
libtpu: 0.0.40
codegen_flags: <defaults>
</compile_context>

<pallas_src>
import math

import jax
import jax.numpy as jnp
from jax.experimental import pallas as pl
from jax.experimental.pallas import tpu as pltpu

_LANE = 512            # lane-dense last dim (multiple of 128)
_MAX_TILE_ROWS = 512   # 512 x 512 x 4B = 1 MiB per f32 buffer


def _round_up(x, m):
    return ((x + m - 1) // m) * m


def _diff_thresh_kernel(scale_ref, img_ref, th_ref, out_ref):
    # scale_ref: (1,) f32 in SMEM, holds alpha / (img_max - img_min)
    # img_ref / th_ref / out_ref: (tile_rows, LANE) blocks in VMEM
    scale = scale_ref[0]
    out_ref[...] = ((img_ref[...] - th_ref[...]) * scale).astype(out_ref.dtype)


def difference_thresh(img, th, alpha, img_min=0.0, img_max=1.0):
    """Pallas implementation of DifferenceThresh.forward((img, th))."""
    assert img.shape == th.shape, "img and th must have the same shape"
    assert img.dtype == th.dtype, "img and th must have the same dtype"
    assert img_max != img_min, "img_max == img_min would divide by zero"

    alpha = jnp.asarray(alpha)
    assert alpha.size == 1, "alpha must be a single scalar parameter"

    orig_shape = img.shape
    total = math.prod(orig_shape)

    # Fold the parameter and the constant denominator into one SMEM scalar.
    scale = (alpha.reshape(-1)[:1] / (img_max - img_min)).astype(jnp.float32)

    # ---- Flatten to a lane-dense 2D layout (pure wrapper-side plumbing) ----
    rows = pl.cdiv(total, _LANE)
    tile_rows = min(_MAX_TILE_ROWS, _round_up(rows, 8))   # multiple of 8
    padded_rows = _round_up(rows, tile_rows)
    padded_total = padded_rows * _LANE

    def to_2d(x):
        flat = x.reshape(-1)
        if padded_total != total:
            flat = jnp.pad(flat, (0, padded_total - total))
        return flat.reshape(padded_rows, _LANE)

    img2d = to_2d(img)
    th2d = to_2d(th)

    grid = (padded_rows // tile_rows,)
    blk = pl.BlockSpec((tile_rows, _LANE), lambda i: (i, 0))

    out2d = pl.pallas_call(
        _diff_thresh_kernel,
        out_shape=jax.ShapeDtypeStruct((padded_rows, _LANE), img.dtype),
        grid=grid,
        in_specs=[
            pl.BlockSpec(memory_space=pltpu.MemorySpace.SMEM),  # scale scalar
            blk,                                                # img
            blk,                                                # th
        ],
        out_specs=blk,
        compiler_params=pltpu.CompilerParams(
            dimension_semantics=("parallel",)),
    )(scale, img2d, th2d)

    # ---- Unpad and restore the original NCHW layout ----
    out = out2d.reshape(-1)[:total].reshape(orig_shape)
    return out


if __name__ == "__main__":
    # Deterministic parameter init mirroring the module's build():
    # alpha = full((1,1,1,1), init_alpha=16.0)
    init_alpha = 16.0
    img_min, img_max = 0.0, 1.0
    alpha = jnp.full((1, 1, 1, 1), init_alpha, dtype=jnp.float32)

    key = jax.random.PRNGKey(0)
    k_img, k_th = jax.random.split(key)
    img = jax.random.uniform(k_img, (2, 4, 16, 16), dtype=jnp.float32)
    th = jax.random.uniform(k_th, (2, 4, 16, 16), dtype=jnp.float32)

    out = difference_thresh(img, th, alpha, img_min=img_min, img_max=img_max)
    out = jax.block_until_ready(out)

    # Reference check (plain JAX, mirrors the PyTorch forward).
    ref = (img - th) * alpha / (img_max - img_min)
    assert out.shape == ref.shape and out.dtype == ref.dtype
    assert jnp.allclose(out, ref, atol=1e-6), "mismatch vs reference"

    print("KERNEL_OK")
</pallas_src>

<mosaic_0001>
module attributes {stable_mosaic.version = 11 : i64} {
  func.func @_diff_thresh_kernel(%arg0: i32, %arg1: memref<1xf32, #tpu.memory_space<smem>>, %arg2: memref<8x512xf32, #tpu.memory_space<vmem>>, %arg3: memref<8x512xf32, #tpu.memory_space<vmem>>, %arg4: memref<8x512xf32, #tpu.memory_space<vmem>>) attributes {dimension_semantics = [#tpu.dimension_semantics<parallel>], iteration_bounds = array<i64: 1>, scalar_prefetch = 0 : i64, scratch_operands = 0 : i64, tpu.core_type = #tpu.core_type<tc>, window_params = [{transform_indices = @transform_0, window_bounds = array<i64: 1>}, {transform_indices = @transform_1, window_bounds = array<i64: 8, 512>}, {transform_indices = @transform_2, window_bounds = array<i64: 8, 512>}, {transform_indices = @transform_3, window_bounds = array<i64: 8, 512>}]} {
    %c0 = arith.constant 0 : index
    %0 = memref.load %arg1[%c0] : memref<1xf32, #tpu.memory_space<smem>>
    %c0_0 = arith.constant 0 : index
    %c0_1 = arith.constant 0 : index
    %1 = vector.load %arg2[%c0_0, %c0_1] : memref<8x512xf32, #tpu.memory_space<vmem>>, vector<8x512xf32>
    %c0_2 = arith.constant 0 : index
    %c0_3 = arith.constant 0 : index
    %2 = vector.load %arg3[%c0_2, %c0_3] : memref<8x512xf32, #tpu.memory_space<vmem>>, vector<8x512xf32>
    %3 = arith.subf %1, %2 : vector<8x512xf32>
    %4 = vector.broadcast %0 : f32 to vector<8x512xf32>
    %5 = arith.mulf %3, %4 : vector<8x512xf32>
    %c0_4 = arith.constant 0 : index
    %c0_5 = arith.constant 0 : index
    %6 = vector.load %arg4[%c0_4, %c0_5] : memref<8x512xf32, #tpu.memory_space<vmem>>, vector<8x512xf32>
    tpu.vector_store %arg4[%c0_4, %c0_5], %5 {strides = array<i32>} : memref<8x512xf32, #tpu.memory_space<vmem>>, vector<8x512xf32>,
    return
  }
  func.func @transform_0(%arg0: i32) -> i32 {
    %c0_i32 = arith.constant 0 : i32
    %c0_i32_0 = arith.constant 0 : i32
    return %c0_i32 : i32
  }
  func.func @transform_1(%arg0: i32) -> (i32, i32) {
    %c0_i32 = arith.constant 0 : i32
    %c0_i32_0 = arith.constant 0 : i32
    return %arg0, %c0_i32 : i32, i32
  }
  func.func @transform_2(%arg0: i32) -> (i32, i32) {
    %c0_i32 = arith.constant 0 : i32
    %c0_i32_0 = arith.constant 0 : i32
    return %arg0, %c0_i32 : i32, i32
  }
  func.func @transform_3(%arg0: i32) -> (i32, i32) {
    %c0_i32 = arith.constant 0 : i32
    %c0_i32_0 = arith.constant 0 : i32
    return %arg0, %c0_i32 : i32, i32
  }
}

</mosaic_0001>

<bundles_post_ra>
// kernel: tpu_custom_call.1
= control target key start
LH: loop header
LB: loop body
LE: loop exit
PB: predicated region body
PF: predicated region fallthrough
CT: control target
= control target key end

     0   :  { %9 = vsyncpa [#allocation4], 0  ;;  %s215_s0 = inlined_call_operand.<no memory space> [shape: f32[1], index: 0, kind: input, shape index: {}]   ;;  %s216_s1 = inlined_call_operand.hbm [shape: f32[8,512], index: 1, kind: input, shape index: {}]   ;;  %s217_s2 = inlined_call_operand.hbm [shape: f32[8,512], index: 2, kind: input, shape index: {}]   ;;  %s218_s3 = inlined_call_operand.hbm [shape: f32[8,512], index: 3, kind: output, shape index: {}]  }
   0x1   :  { %10 = vsyncpa [#allocation7], 0 }
   0x2   :  { %11 = vsyncpa [#allocation5], 0  ;;  %s153_s12 = smov [#allocation3]   ;;  %s154_s14 = smov [#allocation6]  }
   0x3   :  { %s20_s13 = sshll.u32 %s153_s12, 4  ;;  %s30_s15 = sshll.u32 %s154_s14, 4  ;;  %s21_s13 = int_to_ptr.vmem [resolvable:$true] %s20_s13  ;;  %s31_s15 = int_to_ptr.vmem [resolvable:$true] %s30_s15 }
   0x4   :  { %s81_s18 = scalar_lea.hbm %s216_s1, 512 }
   0x5   :  { %p82_p0 = scmp.ne.s32.totalorder %s216_s1, %s81_s18  ;;  %p85_p1 = scmp.lt.u32.totalorder %s81_s18, %s216_s1 }
   0x7   :  { %p87_p2 = pnand %p85_p1, %p82_p0 }
   0x9   :  { %90 = shalt.err (!%p87_p2)
}
   0xa   :  { %s91_s23 = scalar_lea.vmem %s21_s13, 512  ;;  %p96_p4 = scmp.lt.s32.totalorder %s21_s13, %s21_s13 }
   0xb   :  { %p92_p3 = scmp.ne.s32.totalorder %s21_s13, %s91_s23  ;;  %p97_p5 = scmp.lt.s32.totalorder %s91_s23, %s91_s23 }
   0xd   :  { %p98_p6 = por %p97_p5, %p96_p4 }
   0xf   :  { %p99_p7 = pnand %p98_p6, %p92_p3 }
  0x11   :  { %102 = shalt.err (!%p99_p7)
}
  0x12   :  { %23 = dma.hbm_to_vmem [thread:$0]  %s216_s1, 512, %s21_s13, [#allocation4]  }
  0x13   :  { %s103_s28 = scalar_lea.hbm %s217_s2, 512 }
  0x14   :  { %p104_p8 = scmp.ne.s32.totalorder %s217_s2, %s103_s28  ;;  %p107_p9 = scmp.lt.u32.totalorder %s103_s28, %s217_s2 }
  0x16   :  { %p109_p10 = pnand %p107_p9, %p104_p8 }
  0x18   :  { %112 = shalt.err (!%p109_p10)
}
  0x19   :  { %s113_s6 = scalar_lea.vmem %s31_s15, 512  ;;  %p118_p12 = scmp.lt.s32.totalorder %s31_s15, %s31_s15 }
  0x1a   :  { %p114_p11 = scmp.ne.s32.totalorder %s31_s15, %s113_s6  ;;  %p119_p13 = scmp.lt.s32.totalorder %s113_s6, %s113_s6 }
  0x1c   :  { %p120_p0 = por %p119_p13, %p118_p12 }
  0x1e   :  { %p121_p1 = pnand %p120_p0, %p114_p11 }
  0x20   :  { %124 = shalt.err (!%p121_p1)
}
  0x21   :  { %33 = dma.hbm_to_vmem [thread:$0]  %s217_s2, 512, %s31_s15, [#allocation7]  }
  0x22   :  { %147 = dma.done.wait [#allocation4], 512  }
  0x23   :  { %148 = vsyncadd [#allocation4], 4294966784 }
  0x24   :  { %149 = dma.done.wait [#allocation7], 512  }
  0x25   :  { %150 = vsyncadd [#allocation7], 4294966784  ;;  %v41_v0 = vld [vmem:[#allocation3] sm:$0xff]  ;;  %v53_v2 = vstv %s215_s0  ;;  %v42_v3 = vld [vmem:[#allocation3 + $0x8] sm:$0xff]  ;;  %s155_s2 = smov [#allocation8]  }
  0x26   :  { %v45_v1 = vld [vmem:[#allocation6] sm:$0xff]  ;;  %v46_v5 = vld [vmem:[#allocation6 + $0x8] sm:$0xff]  ;;  %v43_v6 = vld [vmem:[#allocation3 + $0x10] sm:$0xff]  ;;  %s68_s10 = sshll.u32 %s155_s2, 4  ;;  %s69_s10 = int_to_ptr.vmem [resolvable:$true] %s68_s10 }
  0x27   :  { %v49_v4 = vsub.f32 %v41_v0, %v45_v1  ;;  %v47_v7 = vld [vmem:[#allocation6 + $0x10] sm:$0xff]  ;;  %v50_v8 = vsub.f32 %v42_v3, %v46_v5  ;;  %v44_v10 = vld [vmem:[#allocation3 + $0x18] sm:$0xff]  ;;  %s125_s0 = scalar_lea.vmem %s69_s10, 512  ;;  %p130_p3 = scmp.lt.s32.totalorder %s69_s10, %s69_s10 }
  0x28   :  { %v51_v9 = vsub.f32 %v43_v6, %v47_v7  ;;  %v48_v11 = vld [vmem:[#allocation6 + $0x18] sm:$0xff]  ;;  %p126_p2 = scmp.ne.s32.totalorder %s69_s10, %s125_s0  ;;  %p131_p4 = scmp.lt.s32.totalorder %s125_s0, %s125_s0 }
  0x29   :  { %v54_v12 = vmul.f32 %v53_v2, %v49_v4  ;;  %v52_v13 = vsub.f32 %v44_v10, %v48_v11  ;;  %v55_v14 = vmul.f32 %v53_v2, %v50_v8 }
  0x2a   :  { %v56_v15 = vmul.f32 %v53_v2, %v51_v9  ;;  %p132_p5 = por %p131_p4, %p130_p3 }
  0x2b   :  { %58 = vst [vmem:[#allocation8] sm:$0xff] %v54_v12  ;;  %v57_v16 = vmul.f32 %v53_v2, %v52_v13  ;;  %59 = vst [vmem:[#allocation8 + $0x8] sm:$0xff] %v55_v14 }
  0x2c   :  { %60 = vst [vmem:[#allocation8 + $0x10] sm:$0xff] %v56_v15  ;;  %p133_p6 = pnand %p132_p5, %p126_p2 }
  0x2d   :  { %61 = vst [vmem:[#allocation8 + $0x18] sm:$0xff] %v57_v16 }
  0x2e   :  { %136 = shalt.err (!%p133_p6)
}
  0x2f   :  { %s137_s13 = scalar_lea.hbm %s218_s3, 512 }
  0x30   :  { %p138_p7 = scmp.ne.s32.totalorder %s218_s3, %s137_s13  ;;  %p141_p8 = scmp.lt.u32.totalorder %s137_s13, %s218_s3 }
  0x32   :  { %p143_p9 = pnand %p141_p8, %p138_p7 }
  0x34   :  { %146 = shalt.err (!%p143_p9)
}
  0x35   :  { %71 = dma.vmem_to_hbm [thread:$0]  %s69_s10, 512, %s218_s3, [#allocation5]  }
  0x36   :  { %151 = dma.done.wait [#allocation5], 512  }
  0x37   :  { %152 = vsyncadd [#allocation5], 4294966784 }
  0x38   :  { %75 = vsyncpa [#allocation4], 1 }
  0x39   :  { %76 = vsyncpa [#allocation7], 1 }
  0x3a   :  { %77 = vsyncpa [#allocation5], 1 }

</bundles_post_ra>
